<compile_context>
chip_gen: v7x
topology: tpu7x:2x2x1
jax: 0.10.0
libtpu: 0.0.40
codegen_flags: <defaults>
</compile_context>

<pallas_src>
import jax
import jax.numpy as jnp
from jax import lax
from jax.experimental import pallas as pl
from jax.experimental.pallas import tpu as pltpu


def noise_blaster_kernel(x_ref, w1_ref, b1_ref, w2_ref, b2_ref, o_ref):
    # x_ref:  (TM, D) bf16    w1_ref: (D, H) bf16   b1_ref: (1, H) f32
    # w2_ref: (1, H)  f32     b2_ref: (1,) f32 SMEM o_ref:  (1, 1, TM) f32
    #
    # Layer 1 on the MXU: bf16 operands, f32 accumulation.
    h = jnp.dot(x_ref[...], w1_ref[...], preferred_element_type=jnp.float32)
    h = jnp.maximum(h + b1_ref[...], 0.0)                        # (TM, H) f32

    # Layer 2 (H -> 1) also on the MXU, contracting h's last dim so the TM
    # tokens come out in the lane dimension: (1,H) x (TM,H)^T -> (1, TM).
    # Lane-dense result => unmasked full-width stores to o_ref.
    logits = lax.dot_general(
        w2_ref[...], h,
        dimension_numbers=(((1,), (1,)), ((), ())),
        preferred_element_type=jnp.float32)                      # (1, TM)
    logits = logits + b2_ref[0]                                  # scalar (SMEM)

    # Numerically stable sigmoid: 0.5*(tanh(z/2)+1) — single EUP op.
    o_ref[0] = (0.5 * jnp.tanh(0.5 * logits) + 0.5).astype(o_ref.dtype)


def _round_up(x, m):
    return ((x + m - 1) // m) * m


def _vmem_capacity_bytes():
    try:
        return int(pltpu.get_tpu_info().vmem_capacity_bytes)
    except Exception:
        return 64 << 20            # conservative default (v7x per-core VMEM)


def noise_blaster(x, w1, b1, w2, b2, *, block_tokens=None):
    """x: (B, S, D) -> (B, S) mask probabilities (in x.dtype).

    w1: (D, H), b1: (1, H) or (H,), w2: (1, H) row (second Linear weight), b2: (1,).
    """
    B, S, D = x.shape
    H = w1.shape[1]
    M = B * S

    # bf16 operands for the dominant MXU matmul (f32 accumulation in-kernel).
    x2d = x.reshape(M, D).astype(jnp.bfloat16)
    w1_b = w1.astype(jnp.bfloat16)
    b1_f = b1.reshape(1, H).astype(jnp.float32)
    w2_f = w2.reshape(1, H).astype(jnp.float32)
    b2_f = b2.reshape(1).astype(jnp.float32)

    vmem_cap = _vmem_capacity_bytes()
    m_pad = _round_up(max(M, 1), 128)

    # ---- token tile TM (multiple of 128) -----------------------------------
    if block_tokens is None:
        # Size TM from what is left of VMEM after (worst-case double-buffered)
        # resident weights; x itself is double-buffered by the pipeline.
        w_resident = 2 * (D * H * 2) + 4 * 8 * H * 4
        usable = int(0.85 * vmem_cap) - w_resident - (4 << 20)
        per_buf = max(usable // 3, 1 << 20)
        tm = (per_buf // (2 * D) // 128) * 128
        tm = max(512, min(tm, 8192))
        if m_pad >= 256:
            # Keep at least 2 grid steps so both v7x TensorCores get work.
            tm = min(tm, _round_up(pl.cdiv(M, 2), 128))
    else:
        tm = max(128, _round_up(block_tokens, 128))
    tm = max(128, min(tm, m_pad))
    grid = pl.cdiv(M, tm)            # ragged tail handled by Pallas, no jnp.pad

    # ---- VMEM limit: generation aware, never clamped below the need --------
    need = (2 * tm * D * 2           # x (bf16, double-buffered)
            + 2 * D * H * 2          # W1 (worst case: both buffers)
            + 4 * 8 * H * 4          # b1, w2 (sublane padded)
            + 2 * 8 * tm * 4)        # output blocks (sublane padded)
    vmem_limit = max(32 << 20, need + (16 << 20))
    vmem_limit = min(vmem_limit, (vmem_cap * 29) // 32)   # ~90% of physical
    vmem_limit = int(min(max(vmem_limit, need + (2 << 20)), vmem_cap))

    def build(single_buffer_weights):
        resident = (dict(pipeline_mode=pl.Buffered(1))
                    if single_buffer_weights else {})
        return pl.pallas_call(
            noise_blaster_kernel,
            out_shape=jax.ShapeDtypeStruct((grid, 1, tm), jnp.float32),
            grid_spec=pltpu.PrefetchScalarGridSpec(
                num_scalar_prefetch=0,
                grid=(grid,),
                in_specs=[
                    pl.BlockSpec((tm, D), lambda i: (i, 0)),             # x
                    pl.BlockSpec((D, H), lambda i: (0, 0), **resident),  # W1
                    pl.BlockSpec((1, H), lambda i: (0, 0), **resident),  # b1
                    pl.BlockSpec((1, H), lambda i: (0, 0), **resident),  # w2
                    pl.BlockSpec(memory_space=pltpu.MemorySpace.SMEM),   # b2
                ],
                out_specs=pl.BlockSpec((1, 1, tm), lambda i: (i, 0, 0)),
            ),
            compiler_params=pltpu.CompilerParams(
                dimension_semantics=("parallel",),   # token tiles independent
                vmem_limit_bytes=vmem_limit,
            ),
        )

    try:
        # Constant-index_map weights: single-buffer them to halve their VMEM
        # footprint (matters for large D*H on v7x's 64 MiB VMEM).
        out = build(single_buffer_weights=True)(x2d, w1_b, b1_f, w2_f, b2_f)
    except Exception:
        # pipeline_mode=pl.Buffered(1) unsupported on this JAX/Mosaic version.
        out = build(single_buffer_weights=False)(x2d, w1_b, b1_f, w2_f, b2_f)

    probs = out.reshape(grid * tm)[:M].reshape(B, S)
    return probs.astype(x.dtype)


def init_params(key, embed_dim):
    """Deterministic init mirroring nn.Linear shapes.

    w1 stored pre-transposed (D, H); w2 stored as a (1, H) row; b2 as (1,).
    """
    hidden = embed_dim // 2
    k1, k2, k3, k4 = jax.random.split(key, 4)
    lim1 = 1.0 / jnp.sqrt(embed_dim)
    lim2 = 1.0 / jnp.sqrt(hidden)
    w1 = jax.random.uniform(k1, (embed_dim, hidden), jnp.float32, -lim1, lim1)
    b1 = jax.random.uniform(k2, (1, hidden), jnp.float32, -lim1, lim1)
    w2 = jax.random.uniform(k3, (1, hidden), jnp.float32, -lim2, lim2)
    b2 = jax.random.uniform(k4, (1,), jnp.float32, -lim2, lim2)
    return w1, b1, w2, b2


if __name__ == "__main__":
    key = jax.random.PRNGKey(0)
    kx, kp = jax.random.split(key)

    batch, seq, embed_dim = 2, 8, 32
    x = jax.random.normal(kx, (batch, seq, embed_dim), jnp.float32)
    w1, b1, w2, b2 = init_params(kp, embed_dim)

    mask_prob = noise_blaster(x, w1, b1, w2, b2)
    mask_prob = jax.block_until_ready(mask_prob)
    assert mask_prob.shape == (batch, seq)

    x2 = x.reshape(-1, embed_dim)
    # Reference 1: full f32 math (the PyTorch module's semantics).
    ref32 = jax.nn.sigmoid(jnp.maximum(x2 @ w1 + b1, 0.0) @ w2.T + b2)
    ref32 = ref32.reshape(batch, seq)
    # Reference 2: kernel numerics (bf16 first matmul, f32 accumulation).
    h_bf = jnp.dot(x2.astype(jnp.bfloat16), w1.astype(jnp.bfloat16),
                   preferred_element_type=jnp.float32)
    refbf = jax.nn.sigmoid(jnp.maximum(h_bf + b1, 0.0) @ w2.T + b2)
    refbf = refbf.reshape(batch, seq)

    assert jnp.allclose(mask_prob, refbf, atol=1e-3), "mismatch vs bf16 reference"
    assert jnp.allclose(mask_prob, ref32, atol=1e-2), "mismatch vs f32 reference"

    print("KERNEL_OK")
</pallas_src>

<mosaic_0001>
module attributes {stable_mosaic.version = 11 : i64} {
  func.func @noise_blaster_kernel(%arg0: i32, %arg1: memref<128x32xbf16, #tpu.memory_space<vmem>>, %arg2: memref<32x16xbf16, #tpu.memory_space<vmem>>, %arg3: memref<1x16xf32, #tpu.memory_space<vmem>>, %arg4: memref<1x16xf32, #tpu.memory_space<vmem>>, %arg5: memref<1xf32, #tpu.memory_space<smem>>, %arg6: memref<1x1x128xf32, #tpu.memory_space<vmem>>) attributes {dimension_semantics = [#tpu.dimension_semantics<parallel>], iteration_bounds = array<i64: 1>, scalar_prefetch = 0 : i64, scratch_operands = 0 : i64, tpu.core_type = #tpu.core_type<tc>, window_params = [{transform_indices = @transform_0, window_bounds = array<i64: 128, 32>}, {pipeline_mode = #tpu.pipeline_mode<synchronous>, transform_indices = @transform_1, window_bounds = array<i64: 32, 16>}, {pipeline_mode = #tpu.pipeline_mode<synchronous>, transform_indices = @transform_2, window_bounds = array<i64: 1, 16>}, {pipeline_mode = #tpu.pipeline_mode<synchronous>, transform_indices = @transform_3, window_bounds = array<i64: 1, 16>}, {transform_indices = @transform_4, window_bounds = array<i64: 1>}, {transform_indices = @transform_5, window_bounds = array<i64: 1, 1, 128>}]} {
    %c0 = arith.constant 0 : index
    %c0_0 = arith.constant 0 : index
    %0 = vector.load %arg1[%c0, %c0_0] : memref<128x32xbf16, #tpu.memory_space<vmem>>, vector<128x32xbf16>
    %c0_1 = arith.constant 0 : index
    %c0_2 = arith.constant 0 : index
    %1 = vector.load %arg2[%c0_1, %c0_2] : memref<32x16xbf16, #tpu.memory_space<vmem>>, vector<32x16xbf16>
    %cst = arith.constant dense<0.000000e+00> : vector<128x16xf32>
    %2 = tpu.matmul %0, %1, %cst {dimension_numbers = #tpu.dot_dimension_numbers<[1], [0], [0], [1], [0, 0, 1, 1], [], []>} : vector<128x32xbf16>, vector<32x16xbf16>, vector<128x16xf32> -> vector<128x16xf32>
    %c0_3 = arith.constant 0 : index
    %c0_4 = arith.constant 0 : index
    %3 = vector.load %arg3[%c0_3, %c0_4] : memref<1x16xf32, #tpu.memory_space<vmem>>, vector<1x16xf32>
    %4 = vector.broadcast %3 : vector<1x16xf32> to vector<128x16xf32>
    %5 = arith.addf %2, %4 : vector<128x16xf32>
    %cst_5 = arith.constant 0.000000e+00 : f32
    %6 = vector.broadcast %cst_5 : f32 to vector<128x16xf32>
    %7 = arith.maximumf %5, %6 : vector<128x16xf32>
    %c0_6 = arith.constant 0 : index
    %c0_7 = arith.constant 0 : index
    %8 = vector.load %arg4[%c0_6, %c0_7] : memref<1x16xf32, #tpu.memory_space<vmem>>, vector<1x16xf32>
    %cst_8 = arith.constant dense<0.000000e+00> : vector<1x128xf32>
    %9 = tpu.matmul %8, %7, %cst_8 {dimension_numbers = #tpu.dot_dimension_numbers<[1], [1], [0], [0], [0, 0, 1, 0], [], []>} : vector<1x16xf32>, vector<128x16xf32>, vector<1x128xf32> -> vector<1x128xf32>
    %c0_9 = arith.constant 0 : index
    %10 = memref.load %arg5[%c0_9] : memref<1xf32, #tpu.memory_space<smem>>
    %11 = vector.broadcast %10 : f32 to vector<1x128xf32>
    %12 = arith.addf %9, %11 : vector<1x128xf32>
    %cst_10 = arith.constant 5.000000e-01 : f32
    %13 = vector.broadcast %cst_10 : f32 to vector<1x128xf32>
    %14 = arith.mulf %13, %12 : vector<1x128xf32>
    %15 = math.tanh %14 : vector<1x128xf32>
    %cst_11 = arith.constant 5.000000e-01 : f32
    %16 = vector.broadcast %cst_11 : f32 to vector<1x128xf32>
    %17 = arith.mulf %16, %15 : vector<1x128xf32>
    %cst_12 = arith.constant 5.000000e-01 : f32
    %18 = vector.broadcast %cst_12 : f32 to vector<1x128xf32>
    %19 = arith.addf %17, %18 : vector<1x128xf32>
    %c0_13 = arith.constant 0 : index
    %c0_14 = arith.constant 0 : index
    %c0_15 = arith.constant 0 : index
    %20 = vector.load %arg6[%c0_13, %c0_14, %c0_15] : memref<1x1x128xf32, #tpu.memory_space<vmem>>, vector<1x1x128xf32>
    %21 = vector.shape_cast %20 : vector<1x1x128xf32> to vector<1x128xf32>
    %22 = vector.shape_cast %19 : vector<1x128xf32> to vector<1x1x128xf32>
    tpu.vector_store %arg6[%c0_13, %c0_14, %c0_15], %22 {strides = array<i32>} : memref<1x1x128xf32, #tpu.memory_space<vmem>>, vector<1x1x128xf32>,
    return
  }
  func.func @transform_0(%arg0: i32) -> (i32, i32) {
    %c0_i32 = arith.constant 0 : i32
    %c0_i32_0 = arith.constant 0 : i32
    return %arg0, %c0_i32 : i32, i32
  }
  func.func @transform_1(%arg0: i32) -> (i32, i32) {
    %c0_i32 = arith.constant 0 : i32
    %c0_i32_0 = arith.constant 0 : i32
    %c0_i32_1 = arith.constant 0 : i32
    return %c0_i32, %c0_i32_0 : i32, i32
  }
  func.func @transform_2(%arg0: i32) -> (i32, i32) {
    %c0_i32 = arith.constant 0 : i32
    %c0_i32_0 = arith.constant 0 : i32
    %c0_i32_1 = arith.constant 0 : i32
    return %c0_i32, %c0_i32_0 : i32, i32
  }
  func.func @transform_3(%arg0: i32) -> (i32, i32) {
    %c0_i32 = arith.constant 0 : i32
    %c0_i32_0 = arith.constant 0 : i32
    %c0_i32_1 = arith.constant 0 : i32
    return %c0_i32, %c0_i32_0 : i32, i32
  }
  func.func @transform_4(%arg0: i32) -> i32 {
    %c0_i32 = arith.constant 0 : i32
    %c0_i32_0 = arith.constant 0 : i32
    return %c0_i32 : i32
  }
  func.func @transform_5(%arg0: i32) -> (i32, i32, i32) {
    %c0_i32 = arith.constant 0 : i32
    %c0_i32_0 = arith.constant 0 : i32
    %c0_i32_1 = arith.constant 0 : i32
    return %arg0, %c0_i32, %c0_i32_0 : i32, i32, i32
  }
}

module attributes {stable_mosaic.version = 11 : i64} {
  func.func @noise_blaster_kernel(%arg0: i32, %arg1: memref<128x32xbf16, #tpu.memory_space<vmem>>, %arg2: memref<32x16xbf16, #tpu.memory_space<vmem>>, %arg3: memref<1x16xf32, #tpu.memory_space<vmem>>, %arg4: memref<1x16xf32, #tpu.memory_space<vmem>>, %arg5: memref<1xf32, #tpu.memory_space<smem>>, %arg6: memref<1x1x128xf32, #tpu.memory_space<vmem>>) attributes {dimension_semantics = [#tpu.dimension_semantics<parallel>], iteration_bounds = array<i64: 1>, scalar_prefetch = 0 : i64, scratch_operands = 0 : i64, tpu.core_type = #tpu.core_type<tc>, window_params = [{transform_indices = @transform_0, window_bounds = array<i64: 128, 32>}, {pipeline_mode = #tpu.pipeline_mode<synchronous>, transform_indices = @transform_1, window_bounds = array<i64: 32, 16>}, {pipeline_mode = #tpu.pipeline_mode<synchronous>, transform_indices = @transform_2, window_bounds = array<i64: 1, 16>}, {pipeline_mode = #tpu.pipeline_mode<synchronous>, transform_indices = @transform_3, window_bounds = array<i64: 1, 16>}, {transform_indices = @transform_4, window_bounds = array<i64: 1>}, {transform_indices = @transform_5, window_bounds = array<i64: 1, 1, 128>}]} {
    %c0 = arith.constant 0 : index
    %c0_0 = arith.constant 0 : index
    %0 = vector.load %arg1[%c0, %c0_0] : memref<128x32xbf16, #tpu.memory_space<vmem>>, vector<128x32xbf16>
    %c0_1 = arith.constant 0 : index
    %c0_2 = arith.constant 0 : index
    %1 = vector.load %arg2[%c0_1, %c0_2] : memref<32x16xbf16, #tpu.memory_space<vmem>>, vector<32x16xbf16>
    %cst = arith.constant dense<0.000000e+00> : vector<128x16xf32>
    %2 = tpu.matmul %0, %1, %cst {dimension_numbers = #tpu.dot_dimension_numbers<[1], [0], [0], [1], [0, 0, 1, 1], [], []>} : vector<128x32xbf16>, vector<32x16xbf16>, vector<128x16xf32> -> vector<128x16xf32>
    %c0_3 = arith.constant 0 : index
    %c0_4 = arith.constant 0 : index
    %3 = vector.load %arg3[%c0_3, %c0_4] : memref<1x16xf32, #tpu.memory_space<vmem>>, vector<1x16xf32>
    %4 = vector.broadcast %3 : vector<1x16xf32> to vector<128x16xf32>
    %5 = arith.addf %2, %4 : vector<128x16xf32>
    %cst_5 = arith.constant 0.000000e+00 : f32
    %6 = vector.broadcast %cst_5 : f32 to vector<128x16xf32>
    %7 = arith.maximumf %5, %6 : vector<128x16xf32>
    %c0_6 = arith.constant 0 : index
    %c0_7 = arith.constant 0 : index
    %8 = vector.load %arg4[%c0_6, %c0_7] : memref<1x16xf32, #tpu.memory_space<vmem>>, vector<1x16xf32>
    %cst_8 = arith.constant dense<0.000000e+00> : vector<1x128xf32>
    %9 = tpu.matmul %8, %7, %cst_8 {dimension_numbers = #tpu.dot_dimension_numbers<[1], [1], [0], [0], [0, 0, 1, 0], [], []>} : vector<1x16xf32>, vector<128x16xf32>, vector<1x128xf32> -> vector<1x128xf32>
    %c0_9 = arith.constant 0 : index
    %10 = memref.load %arg5[%c0_9] : memref<1xf32, #tpu.memory_space<smem>>
    %11 = vector.broadcast %10 : f32 to vector<1x128xf32>
    %12 = arith.addf %9, %11 : vector<1x128xf32>
    %cst_10 = arith.constant 5.000000e-01 : f32
    %13 = vector.broadcast %cst_10 : f32 to vector<1x128xf32>
    %14 = arith.mulf %13, %12 : vector<1x128xf32>
    %15 = math.tanh %14 : vector<1x128xf32>
    %cst_11 = arith.constant 5.000000e-01 : f32
    %16 = vector.broadcast %cst_11 : f32 to vector<1x128xf32>
    %17 = arith.mulf %16, %15 : vector<1x128xf32>
    %cst_12 = arith.constant 5.000000e-01 : f32
    %18 = vector.broadcast %cst_12 : f32 to vector<1x128xf32>
    %19 = arith.addf %17, %18 : vector<1x128xf32>
    %c0_13 = arith.constant 0 : index
    %c0_14 = arith.constant 0 : index
    %c0_15 = arith.constant 0 : index
    %20 = vector.load %arg6[%c0_13, %c0_14, %c0_15] : memref<1x1x128xf32, #tpu.memory_space<vmem>>, vector<1x1x128xf32>
    %21 = vector.shape_cast %20 : vector<1x1x128xf32> to vector<1x128xf32>
    %22 = vector.shape_cast %19 : vector<1x128xf32> to vector<1x1x128xf32>
    tpu.vector_store %arg6[%c0_13, %c0_14, %c0_15], %22 {strides = array<i32>} : memref<1x1x128xf32, #tpu.memory_space<vmem>>, vector<1x1x128xf32>,
    return
  }
  func.func @transform_0(%arg0: i32) -> (i32, i32) {
    %c0_i32 = arith.constant 0 : i32
    %c0_i32_0 = arith.constant 0 : i32
    return %arg0, %c0_i32 : i32, i32
  }
  func.func @transform_1(%arg0: i32) -> (i32, i32) {
    %c0_i32 = arith.constant 0 : i32
    %c0_i32_0 = arith.constant 0 : i32
    %c0_i32_1 = arith.constant 0 : i32
    return %c0_i32, %c0_i32_0 : i32, i32
  }
  func.func @transform_2(%arg0: i32) -> (i32, i32) {
    %c0_i32 = arith.constant 0 : i32
    %c0_i32_0 = arith.constant 0 : i32
    %c0_i32_1 = arith.constant 0 : i32
    return %c0_i32, %c0_i32_0 : i32, i32
  }
  func.func @transform_3(%arg0: i32) -> (i32, i32) {
    %c0_i32 = arith.constant 0 : i32
    %c0_i32_0 = arith.constant 0 : i32
    %c0_i32_1 = arith.constant 0 : i32
    return %c0_i32, %c0_i32_0 : i32, i32
  }
  func.func @transform_4(%arg0: i32) -> i32 {
    %c0_i32 = arith.constant 0 : i32
    %c0_i32_0 = arith.constant 0 : i32
    return %c0_i32 : i32
  }
  func.func @transform_5(%arg0: i32) -> (i32, i32, i32) {
    %c0_i32 = arith.constant 0 : i32
    %c0_i32_0 = arith.constant 0 : i32
    %c0_i32_1 = arith.constant 0 : i32
    return %arg0, %c0_i32, %c0_i32_0 : i32, i32, i32
  }
}

</mosaic_0001>

<bundles_post_ra>
// kernel: tpu_custom_call.1
= control target key start
LH: loop header
LB: loop body
LE: loop exit
PB: predicated region body
PF: predicated region fallthrough
CT: control target
= control target key end

     0   :  { %vm102_vm0 = vcmask 261120   ;;  %s698_s0 = inlined_call_operand.vmem [shape: bf16[16,32], index: 0, kind: input, shape index: {}]   ;;  %s699_s1 = inlined_call_operand.vmem [shape: bf16[32,16], index: 1, kind: input, shape index: {}]   ;;  %s700_s2 = inlined_call_operand.vmem [shape: f32[1,16], index: 2, kind: input, shape index: {}]   ;;  %s701_s3 = inlined_call_operand.vmem [shape: f32[1,16], index: 3, kind: input, shape index: {}]   ;;  %s702_s4 = inlined_call_operand.<no memory space> [shape: f32[1], index: 4, kind: input, shape index: {}]   ;;  %s703_s5 = inlined_call_operand.hbm [shape: f32[1,1,128], index: 5, kind: output, shape index: {}]  }
   0x1   :  { %v538_v0 = vld [vmem:[%s699_s1] sm:$0xff]   ;;  %v539_v1 = vld [vmem:[%s699_s1 + $0x8] sm:$0xff]   ;;  %v542_v4 = vld [vmem:[%s698_s0 + $0x10] sm:$0xff]  }
   0x2   :  { %447 = vmatprep.subr.bf16.mxu0 %v538_v0  ;;  %v540_v2 = vld [vmem:[%s698_s0] sm:$0xff]   ;;  %v541_v3 = vld [vmem:[%s698_s0 + $0x8] sm:$0xff]  }
   0x3   :  { %448 = vmatpush3.bf16.msra.mxu0 %v538_v0  ;;  %451 = vmatprep.mubr.msk.bf16.mxu0 %vm102_vm0, %v540_v2 }
   0x4   :  { %449 = vmatprep.subr.bf16.mxu0 %v539_v1 }
   0x7   :  { %450 = vmatpush3.bf16.msra.mxu0 %v539_v1 }
   0xa   :  { %452 = vmatmul.mubr.msk.bf16.vlgmr.msra.gmra.mrb[0].mxu0 %vm102_vm0, %v541_v3 }
   0xb   :  { %11 = vsyncpa [#allocation4], 0  ;;  %455 = vmatprep.mubr.msk.bf16.mxu0 %vm102_vm0, %v542_v4  ;;  %v543_v5 = vld [vmem:[%s698_s0 + $0x18] sm:$0xff]   ;;  %v544_v6 = vld [vmem:[%s698_s0 + $0x20] sm:$0xff]   ;;  %v574_v10 = vmov 0.0|0.0   ;;  %vm575_vm1 = vmmov 0  }
   0xc   :  { %v545_v7 = vld [vmem:[%s698_s0 + $0x28] sm:$0xff]   ;;  %v546_v8 = vld [vmem:[%s698_s0 + $0x30] sm:$0xff]   ;;  %v547_v9 = vld [vmem:[%s698_s0 + $0x38] sm:$0xff]   ;;  %502 = vmatprep.subr.bf16.mxu1 %v574_v10  ;;  %v576_v11 = vmov 0.0   ;;  %vm243_vm2 = vcmask 130048   ;;  %s577_s16 = smov [#allocation3]  }
   0xd   :  { %499 = vmatprep.mubr.msk.f32.mxu1 %vm575_vm1, %v576_v11  ;;  %v384_v12 = vld [vmem:[%s700_s2] ss:$0 sm:$0xff]  ;;  %vm652_vm3 = vmpackc.low %vm243_vm2, %vm243_vm2  ;;  %s376_s17 = sshll.u32 %s577_s16, 4  ;;  %s377_s17 = int_to_ptr.vmem [resolvable:$true] %s376_s17 }
   0xe   :  { %s550_s18 = scalar_lea.vmem %s377_s17, 16  ;;  %p555_p1 = scmp.lt.s32.totalorder %s377_s17, %s377_s17 }
   0xf   :  { %p551_p0 = scmp.ne.s32.totalorder %s377_s17, %s550_s18 }
  0x12   :  { %456 = vmatmul.mubr.msk.bf16.gmra.mrb[4].mxu0 %vm102_vm0, %v543_v5 }
  0x13   :  { %459 = vmatprep.mubr.msk.bf16.mxu0 %vm102_vm0, %v544_v6  ;;  %v240_v6 = vld [vmem:[%s701_s3] sm:$0x1]  ;;  %s554_s3 = scalar_lea.vmem %s377_s17, 32 }
  0x14   :  { %p556_p2 = scmp.lt.s32.totalorder %s554_s3, %s550_s18 }
  0x16   :  { %p557_p3 = por %p556_p2, %p555_p1 }
  0x18   :  { %p558_p4 = pnand %p557_p3, %p551_p0 }
  0x1a   :  { %460 = vmatmul.mubr.msk.bf16.gmra.mrb[8].mxu0 %vm102_vm0, %v545_v7  ;;  %v242_v7 = vstv %s702_s4 }
  0x1b   :  { %463 = vmatprep.mubr.msk.bf16.mxu0 %vm102_vm0, %v546_v8 }
  0x22   :  { %464 = vmatmul.mubr.msk.bf16.gmra.mrb[12].mxu0 %vm102_vm0, %v547_v9 }
  0xdd   :  { %v453_v13 = vpop.f32.mrb[0].mxu0 }
  0xde   :  { %v170_v14 = vadd.f32 %v453_v13, %v384_v12  ;;  %v161_v15 = vpop.f32.mrb[1].mxu0 }
  0xdf   :  { %v162_v16 = vadd.f32 %v384_v12, %v161_v15  ;;  %v454_v17 = vpop.f32.mrb[2].mxu0 }
  0xe0   :  { %v173_v18 = vadd.f32 %v454_v17, %v384_v12  ;;  %v164_v19 = vpop.f32.mrb[3].mxu0  ;;  %v226_v21 = vmax.f32 %v170_v14, 0.0 }
  0xe1   :  { %v165_v20 = vadd.f32 %v384_v12, %v164_v19  ;;  %v224_v23 = vmax.f32 %v162_v16, 0.0 }
  0xe2   :  { %v227_v22 = vmax.f32 %v173_v18, 0.0 }
  0xe3   :  { %v225_v24 = vmax.f32 %v165_v20, 0.0 }
  0xe4   :  { %v507_v25 = vpack.c.bf16 %v227_v22, %v226_v21 }
  0xe5   :  { %v503_v27 = vpack.c.bf16 %v225_v24, %v224_v23  ;;  %v457_v28 = vpop.f32.mrb[4].mxu0 }
  0xe6   :  { %v186_v29 = vadd.f32 %v457_v28, %v384_v12  ;;  %v177_v30 = vpop.f32.mrb[5].mxu0 }
  0xe7   :  { %505 = vmatpush3.bf16.xpose.msk.msra.mxu1 %vm652_vm3, %v503_v27  ;;  %v178_v31 = vadd.f32 %v384_v12, %v177_v30  ;;  %v458_v32 = vpop.f32.mrb[6].mxu0 }
  0xe8   :  { %v230_v33 = vmax.f32 %v186_v29, 0.0  ;;  %v189_v34 = vadd.f32 %v458_v32, %v384_v12  ;;  %v180_v35 = vpop.f32.mrb[7].mxu0  ;;  %506 = vmatprep.subr.bf16.mxu1 %v574_v10 }
  0xe9   :  { %v228_v36 = vmax.f32 %v178_v31, 0.0  ;;  %v181_v37 = vadd.f32 %v384_v12, %v180_v35 }
  0xea   :  { %v231_v38 = vmax.f32 %v189_v34, 0.0 }
  0xeb   :  { %v229_v39 = vmax.f32 %v181_v37, 0.0 }
  0xec   :  { %v515_v40 = vpack.c.bf16 %v231_v38, %v230_v33 }
  0xed   :  { %v511_v41 = vpack.c.bf16 %v229_v39, %v228_v36  ;;  %v461_v42 = vpop.f32.mrb[8].mxu0 }
  0xee   :  { %v202_v43 = vadd.f32 %v461_v42, %v384_v12  ;;  %v193_v44 = vpop.f32.mrb[9].mxu0 }
  0xef   :  { %509 = vmatpush3.bf16.xpose.msk.msra.mxu1 %vm652_vm3, %v507_v25  ;;  %v194_v45 = vadd.f32 %v384_v12, %v193_v44  ;;  %v462_v46 = vpop.f32.mrb[10].mxu0 }
  0xf0   :  { %510 = vmatprep.subr.bf16.mxu1 %v574_v10  ;;  %v234_v47 = vmax.f32 %v202_v43, 0.0  ;;  %v205_v48 = vadd.f32 %v462_v46, %v384_v12  ;;  %v196_v49 = vpop.f32.mrb[11].mxu0 }
  0xf1   :  { %v232_v50 = vmax.f32 %v194_v45, 0.0  ;;  %v197_v51 = vadd.f32 %v384_v12, %v196_v49 }
  0xf2   :  { %v235_v52 = vmax.f32 %v205_v48, 0.0 }
  0xf3   :  { %v233_v53 = vmax.f32 %v197_v51, 0.0 }
  0xf4   :  { %v523_v54 = vpack.c.bf16 %v235_v52, %v234_v47 }
  0xf5   :  { %v519_v55 = vpack.c.bf16 %v233_v53, %v232_v50  ;;  %v465_v56 = vpop.f32.mrb[12].mxu0 }
  0xf6   :  { %v218_v57 = vadd.f32 %v465_v56, %v384_v12  ;;  %v209_v58 = vpop.f32.mrb[13].mxu0 }
  0xf7   :  { %513 = vmatpush3.bf16.xpose.msk.msra.mxu1 %vm652_vm3, %v511_v41  ;;  %v210_v59 = vadd.f32 %v384_v12, %v209_v58  ;;  %v466_v60 = vpop.f32.mrb[14].mxu0 }
  0xf8   :  { %514 = vmatprep.subr.bf16.mxu1 %v574_v10  ;;  %v238_v61 = vmax.f32 %v218_v57, 0.0  ;;  %v221_v62 = vadd.f32 %v466_v60, %v384_v12  ;;  %v212_v63 = vpop.f32.mrb[15].mxu0 }
  0xf9   :  { %v236_v0 = vmax.f32 %v210_v59, 0.0  ;;  %v213_v1 = vadd.f32 %v384_v12, %v212_v63 }
  0xfa   :  { %v239_v2 = vmax.f32 %v221_v62, 0.0 }
  0xfb   :  { %v237_v3 = vmax.f32 %v213_v1, 0.0 }
  0xfc   :  { %v531_v4 = vpack.c.bf16 %v239_v2, %v238_v61 }
  0xfd   :  { %v527_v5 = vpack.c.bf16 %v237_v3, %v236_v0 }
  0xff   :  { %517 = vmatpush3.bf16.xpose.msk.msra.mxu1 %vm652_vm3, %v515_v40 }
 0x100   :  { %518 = vmatprep.subr.bf16.mxu1 %v574_v10 }
 0x107   :  { %521 = vmatpush3.bf16.xpose.msk.msra.mxu1 %vm652_vm3, %v519_v55 }
 0x108   :  { %522 = vmatprep.subr.bf16.mxu1 %v574_v10 }
 0x10f   :  { %525 = vmatpush3.bf16.xpose.msk.msra.mxu1 %vm652_vm3, %v523_v54 }
 0x110   :  { %526 = vmatprep.subr.bf16.mxu1 %v574_v10 }
 0x117   :  { %529 = vmatpush3.bf16.xpose.msk.msra.mxu1 %vm652_vm3, %v527_v5 }
 0x118   :  { %530 = vmatprep.subr.bf16.mxu1 %v574_v10 }
 0x11f   :  { %533 = vmatpush3.bf16.xpose.msk.msra.mxu1 %vm652_vm3, %v531_v4 }
 0x126   :  { %500 = vmatmul.mubr.msk.f32.vlgmr.msra.gmra.mrb[0].mxu1 %vm243_vm2, %v240_v6 }
 0x1f9   :  { %v361_v8 = vpop.f32.mrb[0].mxu1 }
 0x1fa   :  { %v362_v9 = vadd.f32 %v361_v8, %v242_v7  ;;  %v501_v11 = vpop.f32.mrb[1].mxu1 }
 0x1fc   :  { %v365_v12 = vmul.f32 0.5, %v362_v9 }
 0x1fe   :  { %548 = vtanh.f32 %v365_v12 }
 0x208   :  { %v549_v13 = vpop.eup %548 }
 0x209   :  { %v367_v10 = vmul.f32 0.5, %v549_v13 }
 0x20b   :  { %v368_v14 = vadd.f32 0.5, %v367_v10 }
 0x20d   :  { %369 = vst [vmem:[#allocation3] sm:$0x1] %v368_v14 }
 0x20e   :  { %561 = shalt.err (!%p558_p4)
}
 0x20f   :  { %s562_s20 = scalar_lea.hbm %s703_s5, 16 }
 0x210   :  { %p563_p5 = scmp.ne.s32.totalorder %s703_s5, %s562_s20  ;;  %p566_p6 = scmp.lt.u32.totalorder %s562_s20, %s703_s5 }
 0x212   :  { %p568_p7 = pnand %p566_p6, %p563_p5 }
 0x214   :  { %571 = shalt.err (!%p568_p7)
}
 0x215   :  { %379 = dma.vmem_to_hbm [thread:$0]  %s377_s17, 16, %s703_s5, [#allocation4]  }
 0x216   :  { %572 = dma.done.wait [#allocation4], 16  }
 0x217   :  { %573 = vsyncadd [#allocation4], 4294967280 }
 0x218   :  { %383 = vsyncpa [#allocation4], 1 }

// kernel: tpu_custom_call.1
= control target key start
LH: loop header
LB: loop body
LE: loop exit
PB: predicated region body
PF: predicated region fallthrough
CT: control target
= control target key end

     0   :  { %vm102_vm0 = vcmask 261120   ;;  %s698_s0 = inlined_call_operand.vmem [shape: bf16[16,32], index: 0, kind: input, shape index: {}]   ;;  %s699_s1 = inlined_call_operand.vmem [shape: bf16[32,16], index: 1, kind: input, shape index: {}]   ;;  %s700_s2 = inlined_call_operand.vmem [shape: f32[1,16], index: 2, kind: input, shape index: {}]   ;;  %s701_s3 = inlined_call_operand.vmem [shape: f32[1,16], index: 3, kind: input, shape index: {}]   ;;  %s702_s4 = inlined_call_operand.<no memory space> [shape: f32[1], index: 4, kind: input, shape index: {}]   ;;  %s703_s5 = inlined_call_operand.hbm [shape: f32[1,1,128], index: 5, kind: output, shape index: {}]  }
   0x1   :  { %v538_v0 = vld [vmem:[%s699_s1] sm:$0xff]   ;;  %v539_v1 = vld [vmem:[%s699_s1 + $0x8] sm:$0xff]   ;;  %v542_v4 = vld [vmem:[%s698_s0 + $0x10] sm:$0xff]  }
   0x2   :  { %447 = vmatprep.subr.bf16.mxu0 %v538_v0  ;;  %v540_v2 = vld [vmem:[%s698_s0] sm:$0xff]   ;;  %v541_v3 = vld [vmem:[%s698_s0 + $0x8] sm:$0xff]  }
   0x3   :  { %448 = vmatpush3.bf16.msra.mxu0 %v538_v0  ;;  %451 = vmatprep.mubr.msk.bf16.mxu0 %vm102_vm0, %v540_v2 }
   0x4   :  { %449 = vmatprep.subr.bf16.mxu0 %v539_v1 }
   0x7   :  { %450 = vmatpush3.bf16.msra.mxu0 %v539_v1 }
   0xa   :  { %452 = vmatmul.mubr.msk.bf16.vlgmr.msra.gmra.mrb[0].mxu0 %vm102_vm0, %v541_v3 }
   0xb   :  { %11 = vsyncpa [#allocation4], 0  ;;  %455 = vmatprep.mubr.msk.bf16.mxu0 %vm102_vm0, %v542_v4  ;;  %v543_v5 = vld [vmem:[%s698_s0 + $0x18] sm:$0xff]   ;;  %v544_v6 = vld [vmem:[%s698_s0 + $0x20] sm:$0xff]   ;;  %v574_v10 = vmov 0.0|0.0   ;;  %vm575_vm1 = vmmov 0  }
   0xc   :  { %v545_v7 = vld [vmem:[%s698_s0 + $0x28] sm:$0xff]   ;;  %v546_v8 = vld [vmem:[%s698_s0 + $0x30] sm:$0xff]   ;;  %v547_v9 = vld [vmem:[%s698_s0 + $0x38] sm:$0xff]   ;;  %502 = vmatprep.subr.bf16.mxu1 %v574_v10  ;;  %v576_v11 = vmov 0.0   ;;  %vm243_vm2 = vcmask 130048   ;;  %s577_s16 = smov [#allocation3]  }
   0xd   :  { %499 = vmatprep.mubr.msk.f32.mxu1 %vm575_vm1, %v576_v11  ;;  %v384_v12 = vld [vmem:[%s700_s2] ss:$0 sm:$0xff]  ;;  %vm652_vm3 = vmpackc.low %vm243_vm2, %vm243_vm2  ;;  %s376_s17 = sshll.u32 %s577_s16, 4  ;;  %s377_s17 = int_to_ptr.vmem [resolvable:$true] %s376_s17 }
   0xe   :  { %s550_s18 = scalar_lea.vmem %s377_s17, 16  ;;  %p555_p1 = scmp.lt.s32.totalorder %s377_s17, %s377_s17 }
   0xf   :  { %p551_p0 = scmp.ne.s32.totalorder %s377_s17, %s550_s18 }
  0x12   :  { %456 = vmatmul.mubr.msk.bf16.gmra.mrb[4].mxu0 %vm102_vm0, %v543_v5 }
  0x13   :  { %459 = vmatprep.mubr.msk.bf16.mxu0 %vm102_vm0, %v544_v6  ;;  %v240_v6 = vld [vmem:[%s701_s3] sm:$0x1]  ;;  %s554_s3 = scalar_lea.vmem %s377_s17, 32 }
  0x14   :  { %p556_p2 = scmp.lt.s32.totalorder %s554_s3, %s550_s18 }
  0x16   :  { %p557_p3 = por %p556_p2, %p555_p1 }
  0x18   :  { %p558_p4 = pnand %p557_p3, %p551_p0 }
  0x1a   :  { %460 = vmatmul.mubr.msk.bf16.gmra.mrb[8].mxu0 %vm102_vm0, %v545_v7  ;;  %v242_v7 = vstv %s702_s4 }
  0x1b   :  { %463 = vmatprep.mubr.msk.bf16.mxu0 %vm102_vm0, %v546_v8 }
  0x22   :  { %464 = vmatmul.mubr.msk.bf16.gmra.mrb[12].mxu0 %vm102_vm0, %v547_v9 }
  0xdd   :  { %v453_v13 = vpop.f32.mrb[0].mxu0 }
  0xde   :  { %v170_v14 = vadd.f32 %v453_v13, %v384_v12  ;;  %v161_v15 = vpop.f32.mrb[1].mxu0 }
  0xdf   :  { %v162_v16 = vadd.f32 %v384_v12, %v161_v15  ;;  %v454_v17 = vpop.f32.mrb[2].mxu0 }
  0xe0   :  { %v173_v18 = vadd.f32 %v454_v17, %v384_v12  ;;  %v164_v19 = vpop.f32.mrb[3].mxu0  ;;  %v226_v21 = vmax.f32 %v170_v14, 0.0 }
  0xe1   :  { %v165_v20 = vadd.f32 %v384_v12, %v164_v19  ;;  %v224_v23 = vmax.f32 %v162_v16, 0.0 }
  0xe2   :  { %v227_v22 = vmax.f32 %v173_v18, 0.0 }
  0xe3   :  { %v225_v24 = vmax.f32 %v165_v20, 0.0 }
  0xe4   :  { %v507_v25 = vpack.c.bf16 %v227_v22, %v226_v21 }
  0xe5   :  { %v503_v27 = vpack.c.bf16 %v225_v24, %v224_v23  ;;  %v457_v28 = vpop.f32.mrb[4].mxu0 }
  0xe6   :  { %v186_v29 = vadd.f32 %v457_v28, %v384_v12  ;;  %v177_v30 = vpop.f32.mrb[5].mxu0 }
  0xe7   :  { %505 = vmatpush3.bf16.xpose.msk.msra.mxu1 %vm652_vm3, %v503_v27  ;;  %v178_v31 = vadd.f32 %v384_v12, %v177_v30  ;;  %v458_v32 = vpop.f32.mrb[6].mxu0 }
  0xe8   :  { %v230_v33 = vmax.f32 %v186_v29, 0.0  ;;  %v189_v34 = vadd.f32 %v458_v32, %v384_v12  ;;  %v180_v35 = vpop.f32.mrb[7].mxu0  ;;  %506 = vmatprep.subr.bf16.mxu1 %v574_v10 }
  0xe9   :  { %v228_v36 = vmax.f32 %v178_v31, 0.0  ;;  %v181_v37 = vadd.f32 %v384_v12, %v180_v35 }
  0xea   :  { %v231_v38 = vmax.f32 %v189_v34, 0.0 }
  0xeb   :  { %v229_v39 = vmax.f32 %v181_v37, 0.0 }
  0xec   :  { %v515_v40 = vpack.c.bf16 %v231_v38, %v230_v33 }
  0xed   :  { %v511_v41 = vpack.c.bf16 %v229_v39, %v228_v36  ;;  %v461_v42 = vpop.f32.mrb[8].mxu0 }
  0xee   :  { %v202_v43 = vadd.f32 %v461_v42, %v384_v12  ;;  %v193_v44 = vpop.f32.mrb[9].mxu0 }
  0xef   :  { %509 = vmatpush3.bf16.xpose.msk.msra.mxu1 %vm652_vm3, %v507_v25  ;;  %v194_v45 = vadd.f32 %v384_v12, %v193_v44  ;;  %v462_v46 = vpop.f32.mrb[10].mxu0 }
  0xf0   :  { %510 = vmatprep.subr.bf16.mxu1 %v574_v10  ;;  %v234_v47 = vmax.f32 %v202_v43, 0.0  ;;  %v205_v48 = vadd.f32 %v462_v46, %v384_v12  ;;  %v196_v49 = vpop.f32.mrb[11].mxu0 }
  0xf1   :  { %v232_v50 = vmax.f32 %v194_v45, 0.0  ;;  %v197_v51 = vadd.f32 %v384_v12, %v196_v49 }
  0xf2   :  { %v235_v52 = vmax.f32 %v205_v48, 0.0 }
  0xf3   :  { %v233_v53 = vmax.f32 %v197_v51, 0.0 }
  0xf4   :  { %v523_v54 = vpack.c.bf16 %v235_v52, %v234_v47 }
  0xf5   :  { %v519_v55 = vpack.c.bf16 %v233_v53, %v232_v50  ;;  %v465_v56 = vpop.f32.mrb[12].mxu0 }
  0xf6   :  { %v218_v57 = vadd.f32 %v465_v56, %v384_v12  ;;  %v209_v58 = vpop.f32.mrb[13].mxu0 }
  0xf7   :  { %513 = vmatpush3.bf16.xpose.msk.msra.mxu1 %vm652_vm3, %v511_v41  ;;  %v210_v59 = vadd.f32 %v384_v12, %v209_v58  ;;  %v466_v60 = vpop.f32.mrb[14].mxu0 }
  0xf8   :  { %514 = vmatprep.subr.bf16.mxu1 %v574_v10  ;;  %v238_v61 = vmax.f32 %v218_v57, 0.0  ;;  %v221_v62 = vadd.f32 %v466_v60, %v384_v12  ;;  %v212_v63 = vpop.f32.mrb[15].mxu0 }
  0xf9   :  { %v236_v0 = vmax.f32 %v210_v59, 0.0  ;;  %v213_v1 = vadd.f32 %v384_v12, %v212_v63 }
  0xfa   :  { %v239_v2 = vmax.f32 %v221_v62, 0.0 }
  0xfb   :  { %v237_v3 = vmax.f32 %v213_v1, 0.0 }
  0xfc   :  { %v531_v4 = vpack.c.bf16 %v239_v2, %v238_v61 }
  0xfd   :  { %v527_v5 = vpack.c.bf16 %v237_v3, %v236_v0 }
  0xff   :  { %517 = vmatpush3.bf16.xpose.msk.msra.mxu1 %vm652_vm3, %v515_v40 }
 0x100   :  { %518 = vmatprep.subr.bf16.mxu1 %v574_v10 }
 0x107   :  { %521 = vmatpush3.bf16.xpose.msk.msra.mxu1 %vm652_vm3, %v519_v55 }
 0x108   :  { %522 = vmatprep.subr.bf16.mxu1 %v574_v10 }
 0x10f   :  { %525 = vmatpush3.bf16.xpose.msk.msra.mxu1 %vm652_vm3, %v523_v54 }
 0x110   :  { %526 = vmatprep.subr.bf16.mxu1 %v574_v10 }
 0x117   :  { %529 = vmatpush3.bf16.xpose.msk.msra.mxu1 %vm652_vm3, %v527_v5 }
 0x118   :  { %530 = vmatprep.subr.bf16.mxu1 %v574_v10 }
 0x11f   :  { %533 = vmatpush3.bf16.xpose.msk.msra.mxu1 %vm652_vm3, %v531_v4 }
 0x126   :  { %500 = vmatmul.mubr.msk.f32.vlgmr.msra.gmra.mrb[0].mxu1 %vm243_vm2, %v240_v6 }
 0x1f9   :  { %v361_v8 = vpop.f32.mrb[0].mxu1 }
 0x1fa   :  { %v362_v9 = vadd.f32 %v361_v8, %v242_v7  ;;  %v501_v11 = vpop.f32.mrb[1].mxu1 }
 0x1fc   :  { %v365_v12 = vmul.f32 0.5, %v362_v9 }
 0x1fe   :  { %548 = vtanh.f32 %v365_v12 }
 0x208   :  { %v549_v13 = vpop.eup %548 }
 0x209   :  { %v367_v10 = vmul.f32 0.5, %v549_v13 }
 0x20b   :  { %v368_v14 = vadd.f32 0.5, %v367_v10 }
 0x20d   :  { %369 = vst [vmem:[#allocation3] sm:$0x1] %v368_v14 }
 0x20e   :  { %561 = shalt.err (!%p558_p4)
}
 0x20f   :  { %s562_s20 = scalar_lea.hbm %s703_s5, 16 }
 0x210   :  { %p563_p5 = scmp.ne.s32.totalorder %s703_s5, %s562_s20  ;;  %p566_p6 = scmp.lt.u32.totalorder %s562_s20, %s703_s5 }
 0x212   :  { %p568_p7 = pnand %p566_p6, %p563_p5 }
 0x214   :  { %571 = shalt.err (!%p568_p7)
}
 0x215   :  { %379 = dma.vmem_to_hbm [thread:$0]  %s377_s17, 16, %s703_s5, [#allocation4]  }
 0x216   :  { %572 = dma.done.wait [#allocation4], 16  }
 0x217   :  { %573 = vsyncadd [#allocation4], 4294967280 }
 0x218   :  { %383 = vsyncpa [#allocation4], 1 }

</bundles_post_ra>
